<compile_context>
chip_gen: v6e
topology: v6e:2x2x1
jax: 0.10.0
libtpu: 0.0.40
codegen_flags: <defaults>
</compile_context>

<pallas_src>
import functools
import math

import jax
import jax.numpy as jnp
from jax.experimental import pallas as pl
from jax.experimental.pallas import tpu as pltpu

EPS = 1e-6

# ------------------------------- helpers ------------------------------------ #

_VMEM_LIMIT_CACHE = None


def _vmem_limit():
    """Generation-aware scoped-VMEM limit: physical capacity minus headroom."""
    global _VMEM_LIMIT_CACHE
    if _VMEM_LIMIT_CACHE is None:
        cap = 64 << 20  # conservative default (v7x physical)
        try:
            info = pltpu.get_tpu_info()
            cap = int(getattr(info, "vmem_capacity_bytes", cap))
        except Exception:
            pass
        # leave >=16 MiB headroom for Mosaic internal scratch / spills
        _VMEM_LIMIT_CACHE = max(cap - (16 << 20), 32 << 20)
    return _VMEM_LIMIT_CACHE


def _pick_tile(n, target, unit=8, min_blocks=1):
    """Largest tile that is a multiple of `unit`, divides n, is <= target and
    leaves at least `min_blocks` grid steps.  Falls back gracefully."""
    if n <= 0 or n % unit != 0:
        return n  # tiny / unaligned dim: whole-array block
    limit = min(target, n)
    cands = [t for t in range(unit, limit + 1, unit) if n % t == 0]
    if not cands:
        return n
    good = [t for t in cands if n // t >= min_blocks]
    return max(good) if good else max(cands)


def _ln(x, g, b):
    # annotated-transformer LayerNorm: g*(x-mean)/(std+eps)+b with unbiased std.
    mean = jnp.mean(x, axis=-1, keepdims=True)
    d = x - mean
    var = jnp.sum(d * d, axis=-1, keepdims=True) / (x.shape[-1] - 1)
    return g * d / (jnp.sqrt(var) + EPS) + b


def _const_spec(shape):
    # full-array block, constant index_map, SINGLE buffer: fetched once and kept
    # VMEM-resident across row tiles at half the default (double-buffer) footprint.
    return pl.BlockSpec(shape, lambda i: (0,) * len(shape),
                        pipeline_mode=pl.Buffered(1))


# ----------------------------- Pallas kernels ------------------------------- #

def _ln_qkv_kernel(x_ref, g_ref, b_ref, wqkv_ref, bqkv_ref, o_ref):
    h = _ln(x_ref[...], g_ref[...], b_ref[...])                  # f32 (tm, D)
    o_ref[...] = (
        jnp.dot(h.astype(jnp.bfloat16), wqkv_ref[...],
                preferred_element_type=jnp.float32)
        + bqkv_ref[...]
    ).astype(o_ref.dtype)                                        # bf16 activation out


def _flash_attn_kernel(q_ref, k_ref, v_ref, o_ref, m_sc, l_sc, acc_sc, *, tile):
    qi = pl.program_id(1)
    ki = pl.program_id(2)

    @pl.when(ki == 0)
    def _():
        m_sc[...] = jnp.full(m_sc.shape, -jnp.inf, m_sc.dtype)
        l_sc[...] = jnp.zeros(l_sc.shape, l_sc.dtype)
        acc_sc[...] = jnp.zeros(acc_sc.shape, acc_sc.dtype)

    # Causal tile skipping: kv tiles strictly above the diagonal are fully masked.
    # (~2x fewer vmatmuls / exps under a causal mask; tq == tk == tile.)
    @pl.when(ki <= qi)
    def _():
        q = q_ref[0]                                             # (tq, dh) bf16; 1/sqrt(dh) folded into W_q
        k = k_ref[0]                                             # (tk, dh) bf16
        v = v_ref[0]                                             # (tk, dh) bf16

        # q @ k^T without materializing a transposed k tile.
        s = jax.lax.dot_general(q, k, (((1,), (1,)), ((), ())),
                                preferred_element_type=jnp.float32)  # (tq, tk)

        # in-kernel causal mask (no (S,S) mask DMA): global row >= global col.
        row = qi * tile + jax.lax.broadcasted_iota(jnp.int32, s.shape, 0)
        col = ki * tile + jax.lax.broadcasted_iota(jnp.int32, s.shape, 1)
        s = jnp.where(row >= col, s, -1e9)                       # masked_fill(mask==0,-1e9)

        m_prev = m_sc[...]
        m_new = jnp.maximum(m_prev, jnp.max(s, axis=-1, keepdims=True))
        alpha = jnp.exp(m_prev - m_new)
        p = jnp.exp(s - m_new)
        l_sc[...] = alpha * l_sc[...] + jnp.sum(p, axis=-1, keepdims=True)
        acc_sc[...] = alpha * acc_sc[...] + jnp.dot(
            p.astype(jnp.bfloat16), v, preferred_element_type=jnp.float32)
        m_sc[...] = m_new

    @pl.when(ki == pl.num_programs(2) - 1)
    def _():
        o_ref[0] = (acc_sc[...] *
                    pl.reciprocal(l_sc[...], approx=True)).astype(o_ref.dtype)


def _proj_mlp_kernel(a_ref, x_ref, wo_ref, bo_ref, g2_ref, b2_ref,
                     w1_ref, b1_ref, w2_ref, bm2_ref, o_ref):
    # attention output projection + residual (fused, no extra HBM pass);
    # a_ref already bf16, residual stream x_ref stays f32.
    x1 = x_ref[...] + (
        jnp.dot(a_ref[...], wo_ref[...],
                preferred_element_type=jnp.float32) + bo_ref[...])
    # pre-LN MLP + residual
    h = _ln(x1, g2_ref[...], b2_ref[...])
    h = jnp.dot(h.astype(jnp.bfloat16), w1_ref[...],
                preferred_element_type=jnp.float32) + b1_ref[...]
    h = jax.nn.gelu(h, approximate=True)                         # GPT2 gelu_new (tanh)
    o_ref[...] = x1 + (
        jnp.dot(h.astype(jnp.bfloat16), w2_ref[...],
                preferred_element_type=jnp.float32) + bm2_ref[...])


def _layernorm_kernel(x_ref, g_ref, b_ref, o_ref):
    o_ref[...] = _ln(x_ref[...], g_ref[...], b_ref[...])


# ------------------------------- wrappers ------------------------------------ #

def ln_qkv(x2d, g, b, wqkv, bqkv, *, tm):
    M, D = x2d.shape
    N3 = wqkv.shape[1]
    return pl.pallas_call(
        _ln_qkv_kernel,
        out_shape=jax.ShapeDtypeStruct((M, N3), jnp.bfloat16),
        grid_spec=pltpu.PrefetchScalarGridSpec(
            num_scalar_prefetch=0,
            grid=(M // tm,),
            in_specs=[
                pl.BlockSpec((tm, D), lambda i: (i, 0)),
                _const_spec((1, D)),
                _const_spec((1, D)),
                _const_spec((D, N3)),          # bf16 fused QKV weight (q-scale folded)
                _const_spec((1, N3)),
            ],
            out_specs=pl.BlockSpec((tm, N3), lambda i: (i, 0)),
        ),
        compiler_params=pltpu.CompilerParams(
            dimension_semantics=("parallel",),
            vmem_limit_bytes=_vmem_limit()),
    )(x2d, g.reshape(1, D), b.reshape(1, D), wqkv, bqkv.reshape(1, N3))


def flash_attention(q, k, v):
    # q, k, v: (B*H, S, dh) bf16; causal mask built in-kernel.
    BH, S, dh = q.shape
    t = _pick_tile(S, 256)
    kernel = functools.partial(_flash_attn_kernel, tile=t)

    # kv index clamped to the causal range: skipped (fully-masked) steps re-select
    # the previous block index so their K/V DMAs are elided by the pipeline.
    kv_map = lambda b, qi, ki: (b, jnp.minimum(ki, qi), 0)

    return pl.pallas_call(
        kernel,
        out_shape=jax.ShapeDtypeStruct((BH, S, dh), jnp.bfloat16),
        grid_spec=pltpu.PrefetchScalarGridSpec(
            num_scalar_prefetch=0,
            grid=(BH, S // t, S // t),
            in_specs=[
                pl.BlockSpec((1, t, dh), lambda b, qi, ki: (b, qi, 0)),
                pl.BlockSpec((1, t, dh), kv_map),
                pl.BlockSpec((1, t, dh), kv_map),
            ],
            out_specs=pl.BlockSpec((1, t, dh), lambda b, qi, ki: (b, qi, 0)),
            scratch_shapes=[
                pltpu.VMEM((t, 1), jnp.float32),    # running max
                pltpu.VMEM((t, 1), jnp.float32),    # running denom
                pltpu.VMEM((t, dh), jnp.float32),   # accumulator
            ],
        ),
        compiler_params=pltpu.CompilerParams(
            dimension_semantics=("parallel", "parallel", "arbitrary"),
            vmem_limit_bytes=_vmem_limit()),
    )(q, k, v)


def proj_mlp(a2d, x2d, wo, bo, g2, b2, w1, b1, w2, bm2, *, tm):
    M, D = x2d.shape
    FF = w1.shape[1]
    return pl.pallas_call(
        _proj_mlp_kernel,
        out_shape=jax.ShapeDtypeStruct((M, D), jnp.float32),
        grid_spec=pltpu.PrefetchScalarGridSpec(
            num_scalar_prefetch=0,
            grid=(M // tm,),
            in_specs=[
                pl.BlockSpec((tm, D), lambda i: (i, 0)),   # attention output (bf16)
                pl.BlockSpec((tm, D), lambda i: (i, 0)),   # residual stream (f32)
                _const_spec((D, D)),
                _const_spec((1, D)),
                _const_spec((1, D)),
                _const_spec((1, D)),
                _const_spec((D, FF)),
                _const_spec((1, FF)),
                _const_spec((FF, D)),
                _const_spec((1, D)),
            ],
            out_specs=pl.BlockSpec((tm, D), lambda i: (i, 0)),
        ),
        compiler_params=pltpu.CompilerParams(
            dimension_semantics=("parallel",),
            vmem_limit_bytes=_vmem_limit()),
    )(a2d, x2d, wo, bo.reshape(1, D), g2.reshape(1, D), b2.reshape(1, D),
      w1, b1.reshape(1, FF), w2, bm2.reshape(1, D))


def layernorm(x2d, g, b, *, tm):
    M, D = x2d.shape
    return pl.pallas_call(
        _layernorm_kernel,
        out_shape=jax.ShapeDtypeStruct((M, D), jnp.float32),
        grid_spec=pltpu.PrefetchScalarGridSpec(
            num_scalar_prefetch=0,
            grid=(M // tm,),
            in_specs=[
                pl.BlockSpec((tm, D), lambda i: (i, 0)),
                _const_spec((1, D)),
                _const_spec((1, D)),
            ],
            out_specs=pl.BlockSpec((tm, D), lambda i: (i, 0)),
        ),
        compiler_params=pltpu.CompilerParams(
            dimension_semantics=("parallel",),
            vmem_limit_bytes=_vmem_limit()),
    )(x2d, g.reshape(1, D), b.reshape(1, D))


# ----------------------------- model definition ------------------------------ #

def init_params(key, n_layers, d_model, d_ff, n_heads):
    dh = d_model // n_heads
    q_scale = 1.0 / math.sqrt(dh)

    def dense(k, fan_in, fan_out):
        # weights stored bf16: MXU-native inputs, half the HBM/VMEM weight traffic
        return 0.02 * jax.random.normal(k, (fan_in, fan_out), jnp.float32)

    params = []
    for _ in range(n_layers):
        keys = jax.random.split(key, 5)
        key = keys[0]
        # fold 1/sqrt(dh) into the Q columns of the fused QKV weight/bias so the
        # attention kernel never re-scales q per kv tile.
        wqkv = dense(keys[1], d_model, 3 * d_model)
        wqkv = wqkv.at[:, :d_model].multiply(q_scale)
        bqkv = jnp.zeros((3 * d_model,), jnp.float32)
        bqkv = bqkv.at[:d_model].multiply(q_scale)
        layer = dict(
            ln1_g=jnp.ones((d_model,), jnp.float32),
            ln1_b=jnp.zeros((d_model,), jnp.float32),
            wqkv=wqkv.astype(jnp.bfloat16),
            bqkv=bqkv,
            wo=dense(keys[2], d_model, d_model).astype(jnp.bfloat16),
            bo=jnp.zeros((d_model,), jnp.float32),
            ln2_g=jnp.ones((d_model,), jnp.float32),
            ln2_b=jnp.zeros((d_model,), jnp.float32),
            w1=dense(keys[3], d_model, d_ff).astype(jnp.bfloat16),
            b1=jnp.zeros((d_ff,), jnp.float32),
            w2=dense(keys[4], d_ff, d_model).astype(jnp.bfloat16),
            b2=jnp.zeros((d_model,), jnp.float32),
        )
        params.append(layer)
    final = dict(g=jnp.ones((d_model,), jnp.float32),
                 b=jnp.zeros((d_model,), jnp.float32))
    return params, final


def gpt2_decoder_forward(x, mask, layer_params, final_norm, n_heads):
    # `mask` is accepted for interface parity with GPT2_Decoder.forward(x, mask);
    # the attention kernel builds the causal (subsequent) mask in-registers.
    del mask
    B, S, D = x.shape
    dh = D // n_heads

    # Pad the sequence to a multiple of 8.  Under the causal mask padded key
    # positions are only visible to padded query rows, so real outputs are exact.
    Sp = ((S + 7) // 8) * 8
    if Sp != S:
        x = jnp.pad(x, ((0, 0), (0, Sp - S), (0, 0)))

    M = B * Sp
    # smaller row tiles on small-VMEM chips (v7x 64 MiB); >=2 grid steps so both
    # v7x TensorCores are used on the 'parallel' row axis.
    row_target = 256 if _vmem_limit() < (80 << 20) else 512
    tm = _pick_tile(M, row_target, min_blocks=2)

    x2d = x.reshape(M, D)
    for p in layer_params:
        # --- self-attention sublayer (pre-LN, residual) ---
        qkv = ln_qkv(x2d, p["ln1_g"], p["ln1_b"], p["wqkv"], p["bqkv"], tm=tm)
        # (M, 3D) -> (3, B*H, Sp, dh): one bf16 reshape+transpose covers q, k, v
        qkv = (qkv.reshape(B, Sp, 3, n_heads, dh)
                  .transpose(2, 0, 3, 1, 4)
                  .reshape(3, B * n_heads, Sp, dh))
        a = flash_attention(qkv[0], qkv[1], qkv[2])
        a2d = (a.reshape(B, n_heads, Sp, dh)
                .transpose(0, 2, 1, 3)
                .reshape(M, D))
        # --- fused: out-proj + residual + pre-LN MLP + residual ---
        x2d = proj_mlp(a2d, x2d, p["wo"], p["bo"], p["ln2_g"], p["ln2_b"],
                       p["w1"], p["b1"], p["w2"], p["b2"], tm=tm)

    out = layernorm(x2d, final_norm["g"], final_norm["b"], tm=tm)
    out = out.reshape(B, Sp, D)
    if Sp != S:
        out = out[:, :S, :]
    return out


# ---------------------------------- main ------------------------------------- #

if __name__ == "__main__":
    B, S, D, H, FF, N_LAYERS = 2, 8, 32, 4, 64, 2

    key = jax.random.PRNGKey(0)
    kx, kp = jax.random.split(key)
    x = jax.random.normal(kx, (B, S, D), jnp.float32)
    # causal (subsequent) mask: 1 = attend, 0 = blocked; kernels build it in-register
    mask = jnp.tril(jnp.ones((S, S), jnp.float32))

    layer_params, final_norm = init_params(kp, N_LAYERS, D, FF, H)

    fwd = jax.jit(functools.partial(gpt2_decoder_forward, n_heads=H))
    out = fwd(x, mask, layer_params, final_norm)
    jax.block_until_ready(out)

    assert out.shape == (B, S, D) and out.dtype == jnp.float32
    assert bool(jnp.all(jnp.isfinite(out)))
    print("KERNEL_OK")
</pallas_src>

<mosaic_0001>
module attributes {stable_mosaic.version = 11 : i64} {
  func.func @_ln_qkv_kernel(%arg0: i32, %arg1: memref<8x32xf32, #tpu.memory_space<vmem>>, %arg2: memref<1x32xf32, #tpu.memory_space<vmem>>, %arg3: memref<1x32xf32, #tpu.memory_space<vmem>>, %arg4: memref<32x96xbf16, #tpu.memory_space<vmem>>, %arg5: memref<1x96xf32, #tpu.memory_space<vmem>>, %arg6: memref<8x96xbf16, #tpu.memory_space<vmem>>) attributes {dimension_semantics = [#tpu.dimension_semantics<parallel>], iteration_bounds = array<i64: 2>, scalar_prefetch = 0 : i64, scratch_operands = 0 : i64, tpu.core_type = #tpu.core_type<tc>, window_params = [{transform_indices = @transform_0, window_bounds = array<i64: 8, 32>}, {pipeline_mode = #tpu.pipeline_mode<synchronous>, transform_indices = @transform_1, window_bounds = array<i64: 1, 32>}, {pipeline_mode = #tpu.pipeline_mode<synchronous>, transform_indices = @transform_2, window_bounds = array<i64: 1, 32>}, {pipeline_mode = #tpu.pipeline_mode<synchronous>, transform_indices = @transform_3, window_bounds = array<i64: 32, 96>}, {pipeline_mode = #tpu.pipeline_mode<synchronous>, transform_indices = @transform_4, window_bounds = array<i64: 1, 96>}, {transform_indices = @transform_5, window_bounds = array<i64: 8, 96>}]} {
    %c0 = arith.constant 0 : index
    %c0_0 = arith.constant 0 : index
    %0 = vector.load %arg1[%c0, %c0_0] : memref<8x32xf32, #tpu.memory_space<vmem>>, vector<8x32xf32>
    %c0_1 = arith.constant 0 : index
    %c0_2 = arith.constant 0 : index
    %1 = vector.load %arg2[%c0_1, %c0_2] : memref<1x32xf32, #tpu.memory_space<vmem>>, vector<1x32xf32>
    %c0_3 = arith.constant 0 : index
    %c0_4 = arith.constant 0 : index
    %2 = vector.load %arg3[%c0_3, %c0_4] : memref<1x32xf32, #tpu.memory_space<vmem>>, vector<1x32xf32>
    %cst = arith.constant dense<0.000000e+00> : vector<8xf32>
    %3 = vector.multi_reduction <add>, %0, %cst [1] : vector<8x32xf32> to vector<8xf32>
    %4 = vector.shape_cast %3 : vector<8xf32> to vector<8x1xf32>
    %cst_5 = arith.constant 3.200000e+01 : f32
    %5 = vector.broadcast %cst_5 : f32 to vector<8x1xf32>
    %6 = arith.divf %4, %5 : vector<8x1xf32>
    %7 = vector.broadcast %6 : vector<8x1xf32> to vector<8x32xf32>
    %8 = arith.subf %0, %7 : vector<8x32xf32>
    %9 = arith.mulf %8, %8 : vector<8x32xf32>
    %cst_6 = arith.constant dense<0.000000e+00> : vector<8xf32>
    %10 = vector.multi_reduction <add>, %9, %cst_6 [1] : vector<8x32xf32> to vector<8xf32>
    %11 = vector.shape_cast %10 : vector<8xf32> to vector<8x1xf32>
    %cst_7 = arith.constant 3.100000e+01 : f32
    %12 = vector.broadcast %cst_7 : f32 to vector<8x1xf32>
    %13 = arith.divf %11, %12 : vector<8x1xf32>
    %14 = vector.broadcast %1 : vector<1x32xf32> to vector<8x32xf32>
    %15 = arith.mulf %14, %8 : vector<8x32xf32>
    %16 = math.sqrt %13 : vector<8x1xf32>
    %cst_8 = arith.constant 9.99999997E-7 : f32
    %17 = vector.broadcast %cst_8 : f32 to vector<8x1xf32>
    %18 = arith.addf %16, %17 : vector<8x1xf32>
    %19 = vector.broadcast %18 : vector<8x1xf32> to vector<8x32xf32>
    %20 = arith.divf %15, %19 : vector<8x32xf32>
    %21 = vector.broadcast %2 : vector<1x32xf32> to vector<8x32xf32>
    %22 = arith.addf %20, %21 : vector<8x32xf32>
    %23 = arith.truncf %22 : vector<8x32xf32> to vector<8x32xbf16>
    %c0_9 = arith.constant 0 : index
    %c0_10 = arith.constant 0 : index
    %24 = vector.load %arg4[%c0_9, %c0_10] : memref<32x96xbf16, #tpu.memory_space<vmem>>, vector<32x96xbf16>
    %cst_11 = arith.constant dense<0.000000e+00> : vector<8x96xf32>
    %25 = tpu.matmul %23, %24, %cst_11 {dimension_numbers = #tpu.dot_dimension_numbers<[1], [0], [0], [1], [0, 0, 1, 1], [], []>} : vector<8x32xbf16>, vector<32x96xbf16>, vector<8x96xf32> -> vector<8x96xf32>
    %c0_12 = arith.constant 0 : index
    %c0_13 = arith.constant 0 : index
    %26 = vector.load %arg5[%c0_12, %c0_13] : memref<1x96xf32, #tpu.memory_space<vmem>>, vector<1x96xf32>
    %27 = vector.broadcast %26 : vector<1x96xf32> to vector<8x96xf32>
    %28 = arith.addf %25, %27 : vector<8x96xf32>
    %29 = arith.truncf %28 : vector<8x96xf32> to vector<8x96xbf16>
    %c0_14 = arith.constant 0 : index
    %c0_15 = arith.constant 0 : index
    %30 = vector.load %arg6[%c0_14, %c0_15] : memref<8x96xbf16, #tpu.memory_space<vmem>>, vector<8x96xbf16>
    tpu.vector_store %arg6[%c0_14, %c0_15], %29 {strides = array<i32>} : memref<8x96xbf16, #tpu.memory_space<vmem>>, vector<8x96xbf16>,
    return
  }
  func.func @transform_0(%arg0: i32) -> (i32, i32) {
    %c0_i32 = arith.constant 0 : i32
    %c0_i32_0 = arith.constant 0 : i32
    return %arg0, %c0_i32 : i32, i32
  }
  func.func @transform_1(%arg0: i32) -> (i32, i32) {
    %c0_i32 = arith.constant 0 : i32
    %c0_i32_0 = arith.constant 0 : i32
    %c0_i32_1 = arith.constant 0 : i32
    return %c0_i32, %c0_i32_0 : i32, i32
  }
  func.func @transform_2(%arg0: i32) -> (i32, i32) {
    %c0_i32 = arith.constant 0 : i32
    %c0_i32_0 = arith.constant 0 : i32
    %c0_i32_1 = arith.constant 0 : i32
    return %c0_i32, %c0_i32_0 : i32, i32
  }
  func.func @transform_3(%arg0: i32) -> (i32, i32) {
    %c0_i32 = arith.constant 0 : i32
    %c0_i32_0 = arith.constant 0 : i32
    %c0_i32_1 = arith.constant 0 : i32
    return %c0_i32, %c0_i32_0 : i32, i32
  }
  func.func @transform_4(%arg0: i32) -> (i32, i32) {
    %c0_i32 = arith.constant 0 : i32
    %c0_i32_0 = arith.constant 0 : i32
    %c0_i32_1 = arith.constant 0 : i32
    return %c0_i32, %c0_i32_0 : i32, i32
  }
  func.func @transform_5(%arg0: i32) -> (i32, i32) {
    %c0_i32 = arith.constant 0 : i32
    %c0_i32_0 = arith.constant 0 : i32
    return %arg0, %c0_i32 : i32, i32
  }
}

module attributes {stable_mosaic.version = 11 : i64} {
  func.func @_flash_attn_kernel(%arg0: i32, %arg1: i32, %arg2: i32, %arg3: memref<1x8x8xbf16, #tpu.memory_space<vmem>>, %arg4: memref<1x8x8xbf16, #tpu.memory_space<vmem>>, %arg5: memref<1x8x8xbf16, #tpu.memory_space<vmem>>, %arg6: memref<1x8x8xbf16, #tpu.memory_space<vmem>>, %arg7: memref<8x1xf32, #tpu.memory_space<vmem>>, %arg8: memref<8x1xf32, #tpu.memory_space<vmem>>, %arg9: memref<8x8xf32, #tpu.memory_space<vmem>>) attributes {dimension_semantics = [#tpu.dimension_semantics<parallel>, #tpu.dimension_semantics<parallel>, #tpu.dimension_semantics<arbitrary>], iteration_bounds = array<i64: 8, 1, 1>, scalar_prefetch = 0 : i64, scratch_operands = 3 : i64, tpu.core_type = #tpu.core_type<tc>, window_params = [{transform_indices = @transform_0, window_bounds = array<i64: 1, 8, 8>}, {transform_indices = @transform_1, window_bounds = array<i64: 1, 8, 8>}, {transform_indices = @transform_2, window_bounds = array<i64: 1, 8, 8>}, {transform_indices = @transform_3, window_bounds = array<i64: 1, 8, 8>}]} {
    %c0_i32 = arith.constant 0 : i32
    %0 = arith.cmpi eq, %arg2, %c0_i32 : i32
    %1 = arith.extui %0 : i1 to i32
    %c0_i32_0 = arith.constant 0 : i32
    %2 = arith.cmpi ne, %1, %c0_i32_0 : i32
    scf.if %2 {
      %cst = arith.constant 0xFF800000 : f32
      %9 = vector.broadcast %cst : f32 to vector<8x1xf32>
      %c0 = arith.constant 0 : index
      %c0_4 = arith.constant 0 : index
      %10 = vector.load %arg7[%c0, %c0_4] : memref<8x1xf32, #tpu.memory_space<vmem>>, vector<8x1xf32>
      tpu.vector_store %arg7[%c0, %c0_4], %9 {strides = array<i32>} : memref<8x1xf32, #tpu.memory_space<vmem>>, vector<8x1xf32>,
      %cst_5 = arith.constant 0.000000e+00 : f32
      %11 = vector.broadcast %cst_5 : f32 to vector<8x1xf32>
      %c0_6 = arith.constant 0 : index
      %c0_7 = arith.constant 0 : index
      %12 = vector.load %arg8[%c0_6, %c0_7] : memref<8x1xf32, #tpu.memory_space<vmem>>, vector<8x1xf32>
      tpu.vector_store %arg8[%c0_6, %c0_7], %11 {strides = array<i32>} : memref<8x1xf32, #tpu.memory_space<vmem>>, vector<8x1xf32>,
      %cst_8 = arith.constant 0.000000e+00 : f32
      %13 = vector.broadcast %cst_8 : f32 to vector<8x8xf32>
      %c0_9 = arith.constant 0 : index
      %c0_10 = arith.constant 0 : index
      %14 = vector.load %arg9[%c0_9, %c0_10] : memref<8x8xf32, #tpu.memory_space<vmem>>, vector<8x8xf32>
      tpu.vector_store %arg9[%c0_9, %c0_10], %13 {strides = array<i32>} : memref<8x8xf32, #tpu.memory_space<vmem>>, vector<8x8xf32>,
    } else {
    }
    %3 = arith.cmpi sle, %arg2, %arg1 : i32
    %4 = arith.extui %3 : i1 to i32
    %c0_i32_1 = arith.constant 0 : i32
    %5 = arith.cmpi ne, %4, %c0_i32_1 : i32
    scf.if %5 {
      %c0 = arith.constant 0 : index
      %c0_4 = arith.constant 0 : index
      %c0_5 = arith.constant 0 : index
      %9 = vector.load %arg3[%c0, %c0_4, %c0_5] : memref<1x8x8xbf16, #tpu.memory_space<vmem>>, vector<1x8x8xbf16>
      %10 = vector.shape_cast %9 : vector<1x8x8xbf16> to vector<8x8xbf16>
      %c0_6 = arith.constant 0 : index
      %c0_7 = arith.constant 0 : index
      %c0_8 = arith.constant 0 : index
      %11 = vector.load %arg4[%c0_6, %c0_7, %c0_8] : memref<1x8x8xbf16, #tpu.memory_space<vmem>>, vector<1x8x8xbf16>
      %12 = vector.shape_cast %11 : vector<1x8x8xbf16> to vector<8x8xbf16>
      %c0_9 = arith.constant 0 : index
      %c0_10 = arith.constant 0 : index
      %c0_11 = arith.constant 0 : index
      %13 = vector.load %arg5[%c0_9, %c0_10, %c0_11] : memref<1x8x8xbf16, #tpu.memory_space<vmem>>, vector<1x8x8xbf16>
      %14 = vector.shape_cast %13 : vector<1x8x8xbf16> to vector<8x8xbf16>
      %cst = arith.constant dense<0.000000e+00> : vector<8x8xf32>
      %15 = tpu.matmul %10, %12, %cst {dimension_numbers = #tpu.dot_dimension_numbers<[1], [1], [0], [0], [0, 0, 1, 0], [], []>} : vector<8x8xbf16>, vector<8x8xbf16>, vector<8x8xf32> -> vector<8x8xf32>
      %c8_i32 = arith.constant 8 : i32
      %16 = arith.muli %arg1, %c8_i32 : i32
      %17 = tpu.iota {dimensions = array<i32: 0>} : vector<8x8xi32>
      %18 = vector.broadcast %16 : i32 to vector<8x8xi32>
      %19 = arith.addi %18, %17 : vector<8x8xi32>
      %c8_i32_12 = arith.constant 8 : i32
      %20 = arith.muli %arg2, %c8_i32_12 : i32
      %21 = tpu.iota {dimensions = array<i32: 1>} : vector<8x8xi32>
      %22 = vector.broadcast %20 : i32 to vector<8x8xi32>
      %23 = arith.addi %22, %21 : vector<8x8xi32>
      %24 = arith.cmpi sge, %19, %23 : vector<8x8xi32>
      %cst_13 = arith.constant -1.000000e+09 : f32
      %25 = vector.broadcast %cst_13 : f32 to vector<8x8xf32>
      %26 = arith.select %24, %15, %25 : vector<8x8xi1>, vector<8x8xf32>
      %c0_14 = arith.constant 0 : index
      %c0_15 = arith.constant 0 : index
      %27 = vector.load %arg7[%c0_14, %c0_15] : memref<8x1xf32, #tpu.memory_space<vmem>>, vector<8x1xf32>
      %cst_16 = arith.constant dense<0xFF800000> : vector<8xf32>
      %28 = vector.multi_reduction <maximumf>, %26, %cst_16 [1] : vector<8x8xf32> to vector<8xf32>
      %29 = vector.shape_cast %28 : vector<8xf32> to vector<8x1xf32>
      %30 = arith.maximumf %27, %29 : vector<8x1xf32>
      %31 = arith.subf %27, %30 : vector<8x1xf32>
      %32 = math.exp %31 : vector<8x1xf32>
      %33 = vector.broadcast %30 : vector<8x1xf32> to vector<8x8xf32>
      %34 = arith.subf %26, %33 : vector<8x8xf32>
      %35 = math.exp %34 : vector<8x8xf32>
      %c0_17 = arith.constant 0 : index
      %c0_18 = arith.constant 0 : index
      %36 = vector.load %arg8[%c0_17, %c0_18] : memref<8x1xf32, #tpu.memory_space<vmem>>, vector<8x1xf32>
      %37 = arith.mulf %32, %36 : vector<8x1xf32>
      %cst_19 = arith.constant dense<0.000000e+00> : vector<8xf32>
      %38 = vector.multi_reduction <add>, %35, %cst_19 [1] : vector<8x8xf32> to vector<8xf32>
      %39 = vector.shape_cast %38 : vector<8xf32> to vector<8x1xf32>
      %40 = arith.addf %37, %39 : vector<8x1xf32>
      %c0_20 = arith.constant 0 : index
      %c0_21 = arith.constant 0 : index
      %41 = vector.load %arg8[%c0_20, %c0_21] : memref<8x1xf32, #tpu.memory_space<vmem>>, vector<8x1xf32>
      tpu.vector_store %arg8[%c0_20, %c0_21], %40 {strides = array<i32>} : memref<8x1xf32, #tpu.memory_space<vmem>>, vector<8x1xf32>,
      %c0_22 = arith.constant 0 : index
      %c0_23 = arith.constant 0 : index
      %42 = vector.load %arg9[%c0_22, %c0_23] : memref<8x8xf32, #tpu.memory_space<vmem>>, vector<8x8xf32>
      %43 = vector.broadcast %32 : vector<8x1xf32> to vector<8x8xf32>
      %44 = arith.mulf %43, %42 : vector<8x8xf32>
      %45 = arith.truncf %35 : vector<8x8xf32> to vector<8x8xbf16>
      %cst_24 = arith.constant dense<0.000000e+00> : vector<8x8xf32>
      %46 = tpu.matmul %45, %14, %cst_24 {dimension_numbers = #tpu.dot_dimension_numbers<[1], [0], [0], [1], [0, 0, 1, 1], [], []>} : vector<8x8xbf16>, vector<8x8xbf16>, vector<8x8xf32> -> vector<8x8xf32>
      %47 = arith.addf %44, %46 : vector<8x8xf32>
      %c0_25 = arith.constant 0 : index
      %c0_26 = arith.constant 0 : index
      %48 = vector.load %arg9[%c0_25, %c0_26] : memref<8x8xf32, #tpu.memory_space<vmem>>, vector<8x8xf32>
      tpu.vector_store %arg9[%c0_25, %c0_26], %47 {strides = array<i32>} : memref<8x8xf32, #tpu.memory_space<vmem>>, vector<8x8xf32>,
      %c0_27 = arith.constant 0 : index
      %c0_28 = arith.constant 0 : index
      %49 = vector.load %arg7[%c0_27, %c0_28] : memref<8x1xf32, #tpu.memory_space<vmem>>, vector<8x1xf32>
      tpu.vector_store %arg7[%c0_27, %c0_28], %30 {strides = array<i32>} : memref<8x1xf32, #tpu.memory_space<vmem>>, vector<8x1xf32>,
    } else {
    }
    %c0_i32_2 = arith.constant 0 : i32
    %6 = arith.cmpi eq, %arg2, %c0_i32_2 : i32
    %7 = arith.extui %6 : i1 to i32
    %c0_i32_3 = arith.constant 0 : i32
    %8 = arith.cmpi ne, %7, %c0_i32_3 : i32
    scf.if %8 {
      %c0 = arith.constant 0 : index
      %c0_4 = arith.constant 0 : index
      %9 = vector.load %arg9[%c0, %c0_4] : memref<8x8xf32, #tpu.memory_space<vmem>>, vector<8x8xf32>
      %c0_5 = arith.constant 0 : index
      %c0_6 = arith.constant 0 : index
      %10 = vector.load %arg8[%c0_5, %c0_6] : memref<8x1xf32, #tpu.memory_space<vmem>>, vector<8x1xf32>
      %11 = tpu.reciprocal %10 {approx = true} : vector<8x1xf32> -> vector<8x1xf32>
      %12 = vector.broadcast %11 : vector<8x1xf32> to vector<8x8xf32>
      %13 = arith.mulf %9, %12 : vector<8x8xf32>
      %14 = arith.truncf %13 : vector<8x8xf32> to vector<8x8xbf16>
      %c0_7 = arith.constant 0 : index
      %c0_8 = arith.constant 0 : index
      %c0_9 = arith.constant 0 : index
      %15 = vector.load %arg6[%c0_7, %c0_8, %c0_9] : memref<1x8x8xbf16, #tpu.memory_space<vmem>>, vector<1x8x8xbf16>
      %16 = vector.shape_cast %15 : vector<1x8x8xbf16> to vector<8x8xbf16>
      %17 = vector.shape_cast %14 : vector<8x8xbf16> to vector<1x8x8xbf16>
      tpu.vector_store %arg6[%c0_7, %c0_8, %c0_9], %17 {strides = array<i32>} : memref<1x8x8xbf16, #tpu.memory_space<vmem>>, vector<1x8x8xbf16>,
    } else {
    }
    return
  }
  func.func @transform_0(%arg0: i32, %arg1: i32, %arg2: i32) -> (i32, i32, i32) {
    %c0_i32 = arith.constant 0 : i32
    %c0_i32_0 = arith.constant 0 : i32
    return %arg0, %arg1, %c0_i32 : i32, i32, i32
  }
  func.func @transform_1(%arg0: i32, %arg1: i32, %arg2: i32) -> (i32, i32, i32) {
    %0 = arith.minsi %arg2, %arg1 : i32
    %c0_i32 = arith.constant 0 : i32
    %c0_i32_0 = arith.constant 0 : i32
    return %arg0, %0, %c0_i32 : i32, i32, i32
  }
  func.func @transform_2(%arg0: i32, %arg1: i32, %arg2: i32) -> (i32, i32, i32) {
    %0 = arith.minsi %arg2, %arg1 : i32
    %c0_i32 = arith.constant 0 : i32
    %c0_i32_0 = arith.constant 0 : i32
    return %arg0, %0, %c0_i32 : i32, i32, i32
  }
  func.func @transform_3(%arg0: i32, %arg1: i32, %arg2: i32) -> (i32, i32, i32) {
    %c0_i32 = arith.constant 0 : i32
    %c0_i32_0 = arith.constant 0 : i32
    return %arg0, %arg1, %c0_i32 : i32, i32, i32
  }
}

module attributes {stable_mosaic.version = 11 : i64} {
  func.func @_proj_mlp_kernel(%arg0: i32, %arg1: memref<8x32xbf16, #tpu.memory_space<vmem>>, %arg2: memref<8x32xf32, #tpu.memory_space<vmem>>, %arg3: memref<32x32xbf16, #tpu.memory_space<vmem>>, %arg4: memref<1x32xf32, #tpu.memory_space<vmem>>, %arg5: memref<1x32xf32, #tpu.memory_space<vmem>>, %arg6: memref<1x32xf32, #tpu.memory_space<vmem>>, %arg7: memref<32x64xbf16, #tpu.memory_space<vmem>>, %arg8: memref<1x64xf32, #tpu.memory_space<vmem>>, %arg9: memref<64x32xbf16, #tpu.memory_space<vmem>>, %arg10: memref<1x32xf32, #tpu.memory_space<vmem>>, %arg11: memref<8x32xf32, #tpu.memory_space<vmem>>) attributes {dimension_semantics = [#tpu.dimension_semantics<parallel>], iteration_bounds = array<i64: 2>, scalar_prefetch = 0 : i64, scratch_operands = 0 : i64, tpu.core_type = #tpu.core_type<tc>, window_params = [{transform_indices = @transform_0, window_bounds = array<i64: 8, 32>}, {transform_indices = @transform_1, window_bounds = array<i64: 8, 32>}, {pipeline_mode = #tpu.pipeline_mode<synchronous>, transform_indices = @transform_2, window_bounds = array<i64: 32, 32>}, {pipeline_mode = #tpu.pipeline_mode<synchronous>, transform_indices = @transform_3, window_bounds = array<i64: 1, 32>}, {pipeline_mode = #tpu.pipeline_mode<synchronous>, transform_indices = @transform_4, window_bounds = array<i64: 1, 32>}, {pipeline_mode = #tpu.pipeline_mode<synchronous>, transform_indices = @transform_5, window_bounds = array<i64: 1, 32>}, {pipeline_mode = #tpu.pipeline_mode<synchronous>, transform_indices = @transform_6, window_bounds = array<i64: 32, 64>}, {pipeline_mode = #tpu.pipeline_mode<synchronous>, transform_indices = @transform_7, window_bounds = array<i64: 1, 64>}, {pipeline_mode = #tpu.pipeline_mode<synchronous>, transform_indices = @transform_8, window_bounds = array<i64: 64, 32>}, {pipeline_mode = #tpu.pipeline_mode<synchronous>, transform_indices = @transform_9, window_bounds = array<i64: 1, 32>}, {transform_indices = @transform_10, window_bounds = array<i64: 8, 32>}]} {
    %c0 = arith.constant 0 : index
    %c0_0 = arith.constant 0 : index
    %0 = vector.load %arg2[%c0, %c0_0] : memref<8x32xf32, #tpu.memory_space<vmem>>, vector<8x32xf32>
    %c0_1 = arith.constant 0 : index
    %c0_2 = arith.constant 0 : index
    %1 = vector.load %arg1[%c0_1, %c0_2] : memref<8x32xbf16, #tpu.memory_space<vmem>>, vector<8x32xbf16>
    %c0_3 = arith.constant 0 : index
    %c0_4 = arith.constant 0 : index
    %2 = vector.load %arg3[%c0_3, %c0_4] : memref<32x32xbf16, #tpu.memory_space<vmem>>, vector<32x32xbf16>
    %cst = arith.constant dense<0.000000e+00> : vector<8x32xf32>
    %3 = tpu.matmul %1, %2, %cst {dimension_numbers = #tpu.dot_dimension_numbers<[1], [0], [0], [1], [0, 0, 1, 1], [], []>} : vector<8x32xbf16>, vector<32x32xbf16>, vector<8x32xf32> -> vector<8x32xf32>
    %c0_5 = arith.constant 0 : index
    %c0_6 = arith.constant 0 : index
    %4 = vector.load %arg4[%c0_5, %c0_6] : memref<1x32xf32, #tpu.memory_space<vmem>>, vector<1x32xf32>
    %5 = vector.broadcast %4 : vector<1x32xf32> to vector<8x32xf32>
    %6 = arith.addf %3, %5 : vector<8x32xf32>
    %7 = arith.addf %0, %6 : vector<8x32xf32>
    %c0_7 = arith.constant 0 : index
    %c0_8 = arith.constant 0 : index
    %8 = vector.load %arg5[%c0_7, %c0_8] : memref<1x32xf32, #tpu.memory_space<vmem>>, vector<1x32xf32>
    %c0_9 = arith.constant 0 : index
    %c0_10 = arith.constant 0 : index
    %9 = vector.load %arg6[%c0_9, %c0_10] : memref<1x32xf32, #tpu.memory_space<vmem>>, vector<1x32xf32>
    %cst_11 = arith.constant dense<0.000000e+00> : vector<8xf32>
    %10 = vector.multi_reduction <add>, %7, %cst_11 [1] : vector<8x32xf32> to vector<8xf32>
    %11 = vector.shape_cast %10 : vector<8xf32> to vector<8x1xf32>
    %cst_12 = arith.constant 3.200000e+01 : f32
    %12 = vector.broadcast %cst_12 : f32 to vector<8x1xf32>
    %13 = arith.divf %11, %12 : vector<8x1xf32>
    %14 = vector.broadcast %13 : vector<8x1xf32> to vector<8x32xf32>
    %15 = arith.subf %7, %14 : vector<8x32xf32>
    %16 = arith.mulf %15, %15 : vector<8x32xf32>
    %cst_13 = arith.constant dense<0.000000e+00> : vector<8xf32>
    %17 = vector.multi_reduction <add>, %16, %cst_13 [1] : vector<8x32xf32> to vector<8xf32>
    %18 = vector.shape_cast %17 : vector<8xf32> to vector<8x1xf32>
    %cst_14 = arith.constant 3.100000e+01 : f32
    %19 = vector.broadcast %cst_14 : f32 to vector<8x1xf32>
    %20 = arith.divf %18, %19 : vector<8x1xf32>
    %21 = vector.broadcast %8 : vector<1x32xf32> to vector<8x32xf32>
    %22 = arith.mulf %21, %15 : vector<8x32xf32>
    %23 = math.sqrt %20 : vector<8x1xf32>
    %cst_15 = arith.constant 9.99999997E-7 : f32
    %24 = vector.broadcast %cst_15 : f32 to vector<8x1xf32>
    %25 = arith.addf %23, %24 : vector<8x1xf32>
    %26 = vector.broadcast %25 : vector<8x1xf32> to vector<8x32xf32>
    %27 = arith.divf %22, %26 : vector<8x32xf32>
    %28 = vector.broadcast %9 : vector<1x32xf32> to vector<8x32xf32>
    %29 = arith.addf %27, %28 : vector<8x32xf32>
    %30 = arith.truncf %29 : vector<8x32xf32> to vector<8x32xbf16>
    %c0_16 = arith.constant 0 : index
    %c0_17 = arith.constant 0 : index
    %31 = vector.load %arg7[%c0_16, %c0_17] : memref<32x64xbf16, #tpu.memory_space<vmem>>, vector<32x64xbf16>
    %cst_18 = arith.constant dense<0.000000e+00> : vector<8x64xf32>
    %32 = tpu.matmul %30, %31, %cst_18 {dimension_numbers = #tpu.dot_dimension_numbers<[1], [0], [0], [1], [0, 0, 1, 1], [], []>} : vector<8x32xbf16>, vector<32x64xbf16>, vector<8x64xf32> -> vector<8x64xf32>
    %c0_19 = arith.constant 0 : index
    %c0_20 = arith.constant 0 : index
    %33 = vector.load %arg8[%c0_19, %c0_20] : memref<1x64xf32, #tpu.memory_space<vmem>>, vector<1x64xf32>
    %34 = vector.broadcast %33 : vector<1x64xf32> to vector<8x64xf32>
    %35 = arith.addf %32, %34 : vector<8x64xf32>
    %36 = arith.mulf %35, %35 : vector<8x64xf32>
    %37 = arith.mulf %35, %36 : vector<8x64xf32>
    %cst_21 = arith.constant 4.471500e-02 : f32
    %38 = vector.broadcast %cst_21 : f32 to vector<8x64xf32>
    %39 = arith.mulf %38, %37 : vector<8x64xf32>
    %40 = arith.addf %35, %39 : vector<8x64xf32>
    %cst_22 = arith.constant 0.797884583 : f32
    %41 = vector.broadcast %cst_22 : f32 to vector<8x64xf32>
    %42 = arith.mulf %41, %40 : vector<8x64xf32>
    %43 = math.tanh %42 : vector<8x64xf32>
    %cst_23 = arith.constant 1.000000e+00 : f32
    %44 = vector.broadcast %cst_23 : f32 to vector<8x64xf32>
    %45 = arith.addf %44, %43 : vector<8x64xf32>
    %cst_24 = arith.constant 5.000000e-01 : f32
    %46 = vector.broadcast %cst_24 : f32 to vector<8x64xf32>
    %47 = arith.mulf %46, %45 : vector<8x64xf32>
    %48 = arith.mulf %35, %47 : vector<8x64xf32>
    %49 = arith.truncf %48 : vector<8x64xf32> to vector<8x64xbf16>
    %c0_25 = arith.constant 0 : index
    %c0_26 = arith.constant 0 : index
    %50 = vector.load %arg9[%c0_25, %c0_26] : memref<64x32xbf16, #tpu.memory_space<vmem>>, vector<64x32xbf16>
    %cst_27 = arith.constant dense<0.000000e+00> : vector<8x32xf32>
    %51 = tpu.matmul %49, %50, %cst_27 {dimension_numbers = #tpu.dot_dimension_numbers<[1], [0], [0], [1], [0, 0, 1, 1], [], []>} : vector<8x64xbf16>, vector<64x32xbf16>, vector<8x32xf32> -> vector<8x32xf32>
    %c0_28 = arith.constant 0 : index
    %c0_29 = arith.constant 0 : index
    %52 = vector.load %arg10[%c0_28, %c0_29] : memref<1x32xf32, #tpu.memory_space<vmem>>, vector<1x32xf32>
    %53 = vector.broadcast %52 : vector<1x32xf32> to vector<8x32xf32>
    %54 = arith.addf %51, %53 : vector<8x32xf32>
    %55 = arith.addf %7, %54 : vector<8x32xf32>
    %c0_30 = arith.constant 0 : index
    %c0_31 = arith.constant 0 : index
    %56 = vector.load %arg11[%c0_30, %c0_31] : memref<8x32xf32, #tpu.memory_space<vmem>>, vector<8x32xf32>
    tpu.vector_store %arg11[%c0_30, %c0_31], %55 {strides = array<i32>} : memref<8x32xf32, #tpu.memory_space<vmem>>, vector<8x32xf32>,
    return
  }
  func.func @transform_0(%arg0: i32) -> (i32, i32) {
    %c0_i32 = arith.constant 0 : i32
    %c0_i32_0 = arith.constant 0 : i32
    return %arg0, %c0_i32 : i32, i32
  }
  func.func @transform_1(%arg0: i32) -> (i32, i32) {
    %c0_i32 = arith.constant 0 : i32
    %c0_i32_0 = arith.constant 0 : i32
    return %arg0, %c0_i32 : i32, i32
  }
  func.func @transform_2(%arg0: i32) -> (i32, i32) {
    %c0_i32 = arith.constant 0 : i32
    %c0_i32_0 = arith.constant 0 : i32
    %c0_i32_1 = arith.constant 0 : i32
    return %c0_i32, %c0_i32_0 : i32, i32
  }
  func.func @transform_3(%arg0: i32) -> (i32, i32) {
    %c0_i32 = arith.constant 0 : i32
    %c0_i32_0 = arith.constant 0 : i32
    %c0_i32_1 = arith.constant 0 : i32
    return %c0_i32, %c0_i32_0 : i32, i32
  }
  func.func @transform_4(%arg0: i32) -> (i32, i32) {
    %c0_i32 = arith.constant 0 : i32
    %c0_i32_0 = arith.constant 0 : i32
    %c0_i32_1 = arith.constant 0 : i32
    return %c0_i32, %c0_i32_0 : i32, i32
  }
  func.func @transform_5(%arg0: i32) -> (i32, i32) {
    %c0_i32 = arith.constant 0 : i32
    %c0_i32_0 = arith.constant 0 : i32
    %c0_i32_1 = arith.constant 0 : i32
    return %c0_i32, %c0_i32_0 : i32, i32
  }
  func.func @transform_6(%arg0: i32) -> (i32, i32) {
    %c0_i32 = arith.constant 0 : i32
    %c0_i32_0 = arith.constant 0 : i32
    %c0_i32_1 = arith.constant 0 : i32
    return %c0_i32, %c0_i32_0 : i32, i32
  }
  func.func @transform_7(%arg0: i32) -> (i32, i32) {
    %c0_i32 = arith.constant 0 : i32
    %c0_i32_0 = arith.constant 0 : i32
    %c0_i32_1 = arith.constant 0 : i32
    return %c0_i32, %c0_i32_0 : i32, i32
  }
  func.func @transform_8(%arg0: i32) -> (i32, i32) {
    %c0_i32 = arith.constant 0 : i32
    %c0_i32_0 = arith.constant 0 : i32
    %c0_i32_1 = arith.constant 0 : i32
    return %c0_i32, %c0_i32_0 : i32, i32
  }
  func.func @transform_9(%arg0: i32) -> (i32, i32) {
    %c0_i32 = arith.constant 0 : i32
    %c0_i32_0 = arith.constant 0 : i32
    %c0_i32_1 = arith.constant 0 : i32
    return %c0_i32, %c0_i32_0 : i32, i32
  }
  func.func @transform_10(%arg0: i32) -> (i32, i32) {
    %c0_i32 = arith.constant 0 : i32
    %c0_i32_0 = arith.constant 0 : i32
    return %arg0, %c0_i32 : i32, i32
  }
}

module attributes {stable_mosaic.version = 11 : i64} {
  func.func @_layernorm_kernel(%arg0: i32, %arg1: memref<8x32xf32, #tpu.memory_space<vmem>>, %arg2: memref<1x32xf32, #tpu.memory_space<vmem>>, %arg3: memref<1x32xf32, #tpu.memory_space<vmem>>, %arg4: memref<8x32xf32, #tpu.memory_space<vmem>>) attributes {dimension_semantics = [#tpu.dimension_semantics<parallel>], iteration_bounds = array<i64: 2>, scalar_prefetch = 0 : i64, scratch_operands = 0 : i64, tpu.core_type = #tpu.core_type<tc>, window_params = [{transform_indices = @transform_0, window_bounds = array<i64: 8, 32>}, {pipeline_mode = #tpu.pipeline_mode<synchronous>, transform_indices = @transform_1, window_bounds = array<i64: 1, 32>}, {pipeline_mode = #tpu.pipeline_mode<synchronous>, transform_indices = @transform_2, window_bounds = array<i64: 1, 32>}, {transform_indices = @transform_3, window_bounds = array<i64: 8, 32>}]} {
    %c0 = arith.constant 0 : index
    %c0_0 = arith.constant 0 : index
    %0 = vector.load %arg1[%c0, %c0_0] : memref<8x32xf32, #tpu.memory_space<vmem>>, vector<8x32xf32>
    %c0_1 = arith.constant 0 : index
    %c0_2 = arith.constant 0 : index
    %1 = vector.load %arg2[%c0_1, %c0_2] : memref<1x32xf32, #tpu.memory_space<vmem>>, vector<1x32xf32>
    %c0_3 = arith.constant 0 : index
    %c0_4 = arith.constant 0 : index
    %2 = vector.load %arg3[%c0_3, %c0_4] : memref<1x32xf32, #tpu.memory_space<vmem>>, vector<1x32xf32>
    %cst = arith.constant dense<0.000000e+00> : vector<8xf32>
    %3 = vector.multi_reduction <add>, %0, %cst [1] : vector<8x32xf32> to vector<8xf32>
    %4 = vector.shape_cast %3 : vector<8xf32> to vector<8x1xf32>
    %cst_5 = arith.constant 3.200000e+01 : f32
    %5 = vector.broadcast %cst_5 : f32 to vector<8x1xf32>
    %6 = arith.divf %4, %5 : vector<8x1xf32>
    %7 = vector.broadcast %6 : vector<8x1xf32> to vector<8x32xf32>
    %8 = arith.subf %0, %7 : vector<8x32xf32>
    %9 = arith.mulf %8, %8 : vector<8x32xf32>
    %cst_6 = arith.constant dense<0.000000e+00> : vector<8xf32>
    %10 = vector.multi_reduction <add>, %9, %cst_6 [1] : vector<8x32xf32> to vector<8xf32>
    %11 = vector.shape_cast %10 : vector<8xf32> to vector<8x1xf32>
    %cst_7 = arith.constant 3.100000e+01 : f32
    %12 = vector.broadcast %cst_7 : f32 to vector<8x1xf32>
    %13 = arith.divf %11, %12 : vector<8x1xf32>
    %14 = vector.broadcast %1 : vector<1x32xf32> to vector<8x32xf32>
    %15 = arith.mulf %14, %8 : vector<8x32xf32>
    %16 = math.sqrt %13 : vector<8x1xf32>
    %cst_8 = arith.constant 9.99999997E-7 : f32
    %17 = vector.broadcast %cst_8 : f32 to vector<8x1xf32>
    %18 = arith.addf %16, %17 : vector<8x1xf32>
    %19 = vector.broadcast %18 : vector<8x1xf32> to vector<8x32xf32>
    %20 = arith.divf %15, %19 : vector<8x32xf32>
    %21 = vector.broadcast %2 : vector<1x32xf32> to vector<8x32xf32>
    %22 = arith.addf %20, %21 : vector<8x32xf32>
    %c0_9 = arith.constant 0 : index
    %c0_10 = arith.constant 0 : index
    %23 = vector.load %arg4[%c0_9, %c0_10] : memref<8x32xf32, #tpu.memory_space<vmem>>, vector<8x32xf32>
    tpu.vector_store %arg4[%c0_9, %c0_10], %22 {strides = array<i32>} : memref<8x32xf32, #tpu.memory_space<vmem>>, vector<8x32xf32>,
    return
  }
  func.func @transform_0(%arg0: i32) -> (i32, i32) {
    %c0_i32 = arith.constant 0 : i32
    %c0_i32_0 = arith.constant 0 : i32
    return %arg0, %c0_i32 : i32, i32
  }
  func.func @transform_1(%arg0: i32) -> (i32, i32) {
    %c0_i32 = arith.constant 0 : i32
    %c0_i32_0 = arith.constant 0 : i32
    %c0_i32_1 = arith.constant 0 : i32
    return %c0_i32, %c0_i32_0 : i32, i32
  }
  func.func @transform_2(%arg0: i32) -> (i32, i32) {
    %c0_i32 = arith.constant 0 : i32
    %c0_i32_0 = arith.constant 0 : i32
    %c0_i32_1 = arith.constant 0 : i32
    return %c0_i32, %c0_i32_0 : i32, i32
  }
  func.func @transform_3(%arg0: i32) -> (i32, i32) {
    %c0_i32 = arith.constant 0 : i32
    %c0_i32_0 = arith.constant 0 : i32
    return %arg0, %c0_i32 : i32, i32
  }
}

</mosaic_0001>

<bundles_post_ra>
// kernel: gpt2_decoder_forward.8
= control target key start
LH: loop header
LB: loop body
LE: loop exit
PB: predicated region body
PF: predicated region fallthrough
CT: control target
= control target key end

     0   :  { %s681_s12 = smov 0   ;;  %s683_s13 = smov 0   ;;  %s737_s0 = inlined_call_operand.vmem [shape: bf16[8,8,8], index: 0, kind: input, shape index: {}]   ;;  %s738_s1 = inlined_call_operand.vmem [shape: bf16[8,8,8], index: 1, kind: input, shape index: {}]   ;;  %s739_s2 = inlined_call_operand.vmem [shape: bf16[8,8,8], index: 2, kind: input, shape index: {}]   ;;  %s740_s3 = inlined_call_operand.vmem [shape: bf16[8,8,8], index: 3, kind: output, shape index: {}]  }
   0x1   :  { %s685_s14 = smov 0  }
   0x2 LB: > { %s32_s15 = sadd.s32 1, %s651_s13  ;;  %p572_p0 = scmp.ge.s32.totalorder %s655_s14, 1  ;;  %s655_s14 = sphi %s685_s14, %s13_s14   ;;  %s651_s13 = sphi %s683_s13, %s742_s13   ;;  %s647_s12 = sphi %s681_s12, %s741_s12  }
   0x3   : > { %p34_p1 = scmp.ge.s32.totalorder %s32_s15, 8  ;;  %p206_p2 = scmp.lt.s32.totalorder %s655_s14, 9 }
   0x5   : > { %s744_s15 = smov (%p34_p1, %s32_s15), 0  ;;  %p207_p3 = pnand %p572_p0, %p206_p2 }
   0x6   : > { %p252_p4 = scmp.lt.s32.totalorder (!%p207_p3), %s647_s12, 7 }
   0x7   : > { %210 = sbr.rel (%p207_p3) target bundleno = 793 (0x319), region = 32 }
   0xc   : > { %vm296_vm0 = vcmask 64512   ;;  %v657_v0 = vmov 0.0   ;;  %vm658_vm1 = vmmov 0   ;;  %s746_s12 = smov (!%p252_p4, %s647_s12), 7  ;;  %vm293_vm2 = vcmask 7168  }
   0xd   : > { %585 = vmatprep.subr.bf16.mxu0 %v657_v0  ;;  %297 = vst.msk [vmem:[#allocation4] sm:$0xff] %vm296_vm0, %v657_v0  ;;  %587 = vmatprep.mubr.msk.bf16.mxu0 %vm658_vm1, %v657_v0  ;;  %s700_s16 = sshll.u32 %s746_s12, 2  ;;  %v659_v4 = vmov -inf   ;;  %v353_v5 = vlaneseq  ;;  %v660_v14 = vmov 0   ;;  %vm399_vm4 = vcmask 1043456  }
   0xe   : > { %591 = vmatprep.subr.bf16.mxu1 %v657_v0  ;;  %593 = vmatprep.mubr.msk.bf16.mxu1 %vm658_vm1, %v657_v0  ;;  %s267_s19 = scalar_lea.vmem %s738_s1, %s700_s16  ;;  %s258_s22 = scalar_lea.vmem %s737_s0, %s700_s16  ;;  %294 = vst.msk [vmem:[#allocation2] sm:$0xff] %vm293_vm2, %v659_v4  ;;  %295 = vst.msk [vmem:[#allocation3] sm:$0xff] %vm293_vm2, %v657_v0  ;;  %vm459_vm5 = vcmask 60416  }
   0xf   : > { %v303_v1 = vld [vmem:[%s267_s19] sm:$0xf]  ;;  %v354_v6 = vshrl.u32 %v353_v5, 7  ;;  %v359_v7 = vand.u32 127, %v353_v5  ;;  %625 = vset.pattern.permute.xlu0 %v660_v14  ;;  %626 = vset.pattern.permute.xlu1 %v660_v14  ;;  %s278_s25 = scalar_lea.vmem %s739_s2, %s700_s16  ;;  %s287_s28 = scalar_lea.vmem %s740_s3, %s700_s16 }
  0x10   : > { %v310_v2 = vsel %vm296_vm0, %v303_v1, 0  ;;  %v302_v3 = vld [vmem:[%s258_s22] sm:$0xf] }
  0x11   : > { %586 = vmatpush3.bf16.xpose.msra.mxu0 %v310_v2  ;;  %vm362_vm3 = vcmp.ge.s32.totalorder %v354_v6, %v359_v7  ;;  %v304_v19 = vld [vmem:[%s278_s25] sm:$0xf] }
  0x12   : > { %v401_v20 = vsel %vm399_vm4, %v304_v19, 0 }
  0x13   : > { %592 = vmatpush3.bf16.msra.mxu1 %v401_v20 }
  0x14   : > { %v388_v35 = vld [vmem:[#allocation4] sm:$0xff] }
  0x15   : > { %v364_v15 = vld [vmem:[#allocation2] sm:$0xff]  ;;  %v380_v29 = vld [vmem:[#allocation3] sm:$0xff] }
  0x18   : > { %588 = vmatmul.mubr.msk.bf16.vlgmr.msra.gmra.mxu0 %vm296_vm0, %v302_v3 }
  0xd8   : > { %v346_v8 = vpop.f32.mrf.mxu0 }
  0xd9   : > { %v363_v9 = vsel %vm362_vm3, %v346_v8, -1e+09 }
  0xda   : > { %v589_v10 = vpop.f32.mrf.mxu0  ;;  %v365_v11 = vsel %vm296_vm0, %v363_v9, -inf }
  0xdb   : > { %366 = vmax.xlane.f32.xlu0 %v365_v11 }
  0xdc   : > { %v349_v12 = vpop.f32.mrf.mxu0 }
  0xde   : > { %v590_v13 = vpop.f32.mrf.mxu0 }
 0x164   : > { %v367_v16 = vpop.xlane.xlu0 %366 }
 0x165   : > { %v368_v17 = vmax.f32 %v364_v15, %v367_v16 }
 0x167   : > { %v369_v18 = vsub.f32 %v364_v15, %v368_v17  ;;  %445 = vst.msk [vmem:[#allocation2] sm:$0xff] %vm293_vm2, %v368_v17  ;;  %374 = vperm.xlu0 %625, %v368_v17  }
 0x169   : > { %v370_v25 = vmul.f32 1.442695, %v369_v18 }
 0x1e2   : > { %v375_v21 = vpop.permute.xlu0 %374 }
 0x1e3   : > { %v377_v22 = vsub.f32 %v363_v9, %v375_v21 }
 0x1e5   : > { %v378_v23 = vmul.f32 1.442695, %v377_v22 }
 0x1e7   : > { %627 = vpow2.f32 %v378_v23 }
 0x1e8   : > { %629 = vpow2.f32 %v370_v25 }
 0x1f4   : > { %v628_v24 = vpop.eup %627 }
 0x1f5   : > { %v382_v26 = vsel %vm296_vm0, %v628_v24, 0.0  ;;  %v395_v27 = vpack.c.bf16 %v628_v24, %v628_v24  ;;  %v630_v28 = vpop.eup %629 }
 0x1f6   : > { %383 = vadd.xlane.f32.xlu1 %v382_v26  ;;  %v381_v30 = vmul.f32 %v630_v28, %v380_v29 }
 0x1f7   : > { %594 = vmatmul.mubr.msk.bf16.vlgmr.msra.gmra.mxu1 %vm296_vm0, %v395_v27 }
 0x207   : > { %391 = vperm.xlu1 %626, %v630_v28  }
 0x27f   : > { %v384_v31 = vpop.xlane.xlu1 %383 }
 0x280   : > { %v385_v32 = vadd.f32 %v384_v31, %v381_v30 }
 0x282   : > { %387 = vst.msk [vmem:[#allocation3] sm:$0xff] %vm293_vm2, %v385_v32 }
 0x283   : > { %v392_v36 = vpop.permute.xlu1 %391 }
 0x284   : > { %v394_v37 = vmul.f32 %v392_v36, %v388_v35 }
 0x289   : > { %v450_v33 = vld [vmem:[#allocation3] sm:$0xff] }
 0x28a   : > { %631 = vrcp.f32 %v450_v33 }
 0x297   : > { %v632_v34 = vpop.eup %631 }
 0x298   : > { %454 = vperm.xlu1 %626, %v632_v34  }
 0x2b7   : > { %v437_v38 = vpop.f32.mrf.mxu1 }
 0x2b8   : > { %v443_v39 = vadd.f32 %v437_v38, %v394_v37 }
 0x2b9   : > { %v595_v40 = vpop.f32.mrf.mxu1 }
 0x2ba   : > { %444 = vst.msk [vmem:[#allocation4] sm:$0xff] %vm296_vm0, %v443_v39 }
 0x2bb   : > { %v440_v41 = vpop.f32.mrf.mxu1 }
 0x2bd   : > { %v596_v42 = vpop.f32.mrf.mxu1 }
 0x2c1   : > { %v449_v43 = vld [vmem:[#allocation4] sm:$0xff] }
 0x313   : > { %v455_v44 = vpop.permute.xlu1 %454 }
 0x314   : > { %v457_v45 = vmul.f32 %v455_v44, %v449_v43 }
 0x316   : > { %v458_v46 = vpack.c.bf16 %v457_v45, %v457_v45 }
 0x318   : > { %460 = vst.msk [vmem:[%s287_s28] sm:$0xf] %vm459_vm5, %v458_v46 }
 0x319 PF: > { %s13_s14 = sadd.s32 1, %s655_s14   ;;  %s741_s12 = smov %s651_s13 }
 0x31a   : > { %p10_p5 = scmp.ge.s32.totalorder %s13_s14, 10   ;;  %s742_s13 = smov %s744_s15 }
 0x31c   :  { %12 = sbr.rel (!%p10_p5) target bundleno = 2 (0x2), region = 80 }

// kernel: gpt2_decoder_forward.13
= control target key start
LH: loop header
LB: loop body
LE: loop exit
PB: predicated region body
PF: predicated region fallthrough
CT: control target
= control target key end

     0   :  { %8 = vsyncpa [#allocation3], 0  ;;  %s514_s0 = inlined_call_operand.vmem [shape: f32[16,32], index: 0, kind: input, shape index: {}]   ;;  %s515_s1 = inlined_call_operand.vmem [shape: f32[1,32], index: 1, kind: input, shape index: {}]   ;;  %s516_s2 = inlined_call_operand.vmem [shape: f32[1,32], index: 2, kind: input, shape index: {}]   ;;  %s517_s3 = inlined_call_operand.hbm [shape: f32[16,32], index: 3, kind: output, shape index: {}]  }
   0x1   :  { %10 = vsyncpa [#allocation3 + $0x1], 0  ;;  %s418_s12 = smov 0   ;;  %s420_s13 = smov 0  }
   0x2   :  { %s422_s14 = smov 0   ;;  %s424_s15 = smov 0  }
   0x3 LB: > { %s439_s16 = sadd.s32 4294967295, %s395_s15   ;;  %s280_s17 = sadd.s32 4294967294, %s395_s15   ;;  %s395_s15 = sphi %s424_s15, %s523_s15   ;;  %s391_s14 = sphi %s422_s14, %s522_s14   ;;  %s387_s13 = sphi %s420_s13, %s521_s13   ;;  %s383_s12 = sphi %s418_s12, %s520_s12  }
   0x4   : > { %s443_s18 = sadd.s32 1, %s395_s15   ;;  %s91_s19 = sadd.s32 1, %s391_s14 }
   0x5   : > { %s88_s20 = ssub.s32 %s395_s15, %s443_s18  ;;  %p101_p0 = scmp.ne.s32.totalorder %s391_s14, %s387_s13 }
   0x6   : > { %p89_p1 = scmp.eq.s32.totalorder %s88_s20, 0  ;;  %p102_p2 = scmp.eq.s32.totalorder %s439_s16, 1 }
   0x7   : > { %p107_p3 = scmp.ne.s32.totalorder %s387_s13, %s383_s12  ;;  %p108_p4 = scmp.eq.s32.totalorder %s280_s17, 1 }
   0x8   : > { %s454_s21 = scalar_select %p89_p1, %s391_s14, %s91_s19  }
   0x9   : > { %p456_p5 = por %p102_p2, %p101_p0  ;;  %p460_p6 = por %p108_p4, %p107_p3 }
   0xa   : > { %p283_p7 = scmp.ge.s32.totalorder %s395_s15, 1  ;;  %p139_p8 = scmp.lt.s32.totalorder %s395_s15, 3 }
   0xc   : > { %p140_p9 = pnand %p283_p7, %p139_p8 }
   0xd   : > { %p162_p10 = scmp.lt.s32.totalorder (!%p140_p9), %s439_s16, 1  ;;  %s159_s29 = sand.u32 (!%p140_p9), 1, %s387_s13  }
   0xe   : > { %143 = sbr.rel (%p140_p9) target bundleno = 361 (0x169), region = 32  ;;  %s284_s30 = sshll.u32 (!%p140_p9), %s159_s29, 3 }
   0xf   : > { %s289_s8 = sshll.u32 (!%p140_p9), %s439_s16, 7  ;;  %s161_s9 = scalar_lea.vmem (!%p140_p9), [#allocation2], %s284_s30 }
  0x10   : > { %s221_s10 = sshll.u32 (!%p140_p9), %s161_s9, 4  ;;  %s219_s19 = scalar_lea.hbm (!%p140_p9), %s517_s3, %s289_s8  ;;  %s222_s10 = int_to_ptr.vmem [resolvable:$true] %s221_s10 }
  0x11   : > { %s208_s20 = scalar_lea.sflag (!%p140_p9), [#allocation3], %s159_s29 }
  0x13   : > { %s163_s24 = scalar_select %p162_p10, %s439_s16, 1  ;;  %vm169_vm0 = vcmask 261120   ;;  %v286_v15 = vld [vmem:[%s515_s1] ss:$0 sm:$0xff] }
  0x14   : > { %v287_v18 = vld [vmem:[%s516_s2] ss:$0 sm:$0xff] }
  0x15   : > { %s285_s25 = sshll.u32 %s163_s24, 3  ;;  %s335_s24 = scalar_lea.vmem %s222_s10, 128 }
  0x16   : > { %s165_s28 = scalar_lea.vmem %s514_s0, %s285_s25  ;;  %p336_p11 = scmp.ne.s32.totalorder %s222_s10, %s335_s24 }
  0x17   : > { %v166_v0 = vld [vmem:[%s165_s28] sm:$0xff]  ;;  %s397_s25 = smov [#allocation2]  }
  0x18   : > { %v170_v1 = vsel %vm169_vm0, %v166_v0, 0.0  ;;  %p337_p12 = pnand %p336_p11, %p456_p5  ;;  %s339_s26 = sshll.u32 %s397_s25, 4  ;;  %s340_s26 = int_to_ptr.vmem [resolvable:$false] %s339_s26 }
  0x19   : > { %171 = vadd.xlane.f32.xlu0 %v170_v1  ;;  %s341_s16 = scalar_lea.vmem %s340_s26, 256  ;;  %p342_p0 = scmp.lt.s32.totalorder %s222_s10, %s340_s26 }
  0x1a   : > { %p338_p13 = pneg %p337_p12  ;;  %p343_p1 = scmp.lt.s32.totalorder %s341_s16, %s335_s24 }
  0x1c   : > { %p344_p2 = por %p343_p1, %p342_p0 }
  0x1e   : > { %p345_p3 = pnand %p344_p2, %p338_p13 }
  0xa2   : > { %v172_v2 = vpop.xlane.xlu0 %171 }
  0xa3   : > { %v174_v3 = vmul.f32 0.03125, %v172_v2 }
  0xa5   : > { %v175_v4 = vsub.f32 %v166_v0, %v174_v3 }
  0xa7   : > { %v176_v5 = vmul.f32 %v175_v4, %v175_v4  ;;  %v188_v16 = vmul.f32 %v286_v15, %v175_v4 }
  0xa9   : > { %v177_v6 = vsel %vm169_vm0, %v176_v5, 0.0 }
  0xaa   : > { %178 = vadd.xlane.f32.xlu0 %v177_v6 }
 0x133   : > { %v179_v7 = vpop.xlane.xlu0 %178 }
 0x134   : > { %v181_v8 = vmul.f32 0.032258064, %v179_v7 }
 0x136   : > { %331 = vrsqrt.f32 %v181_v8  ;;  %vm191_vm1 = vcmp.eq.f32.partialorder %v181_v8, inf  ;;  %v194_v11 = vand.u32 2147483648, %v181_v8  ;;  %vm193_vm2 = vcmp.eq.f32.partialorder %v181_v8, 0.0 }
 0x143   : > { %v332_v9 = vpop.eup %331 }
 0x144   : > { %v190_v10 = vmul.f32 %v332_v9, %v181_v8 }
 0x146   : > { %v192_v12 = vsel %vm191_vm1, %v181_v8, %v190_v10 }
 0x147   : > { %v195_v13 = vsel %vm193_vm2, %v194_v11, %v192_v12 }
 0x148   : > { %v196_v14 = vadd.f32 1e-06, %v195_v13 }
 0x14a   : > { %333 = vrcp.f32 %v196_v14 }
 0x157   : > { %v334_v17 = vpop.eup %333 }
 0x158   : > { %v198_v19 = vmul.f32 %v334_v17, %v188_v16 }
 0x15a   : > { %v205_v20 = vadd.f32 %v287_v18, %v198_v19 }
 0x15c   : > { %206 = vst.msk [vmem:[%s161_s9] sm:$0xff] %vm169_vm0, %v205_v20 }
 0x15d   : > { %348 = shalt.err (!%p345_p3)
}
 0x15e   : > { %s349_s27 = scalar_lea.hbm %s219_s19, 128  ;;  %s353_s30 = scalar_lea.hbm %s517_s3, 256 }
 0x15f   : > { %p350_p4 = scmp.ne.s32.totalorder %s219_s19, %s349_s27  ;;  %p354_p9 = scmp.lt.s32.totalorder %s219_s19, %s517_s3 }
 0x160   : > { %p355_p10 = scmp.lt.s32.totalorder %s353_s30, %s349_s27 }
 0x161   : > { %p351_p7 = pnand %p350_p4, %p456_p5 }
 0x162   : > { %p356_p11 = por %p355_p10, %p354_p9 }
 0x163   : > { %p352_p8 = pneg %p351_p7 }
 0x165   : > { %p357_p12 = pnand %p356_p11, %p352_p8 }
 0x167   : > { %360 = shalt.err (!%p357_p12)
}
 0x168   : > { %292 = dma.vmem_to_hbm [thread:$0]  (%p456_p5), %s222_s10, 128, %s219_s19, %s208_s20  }
 0x169 PF: > { %p298_p13 = scmp.ge.s32.totalorder %s395_s15, 2  ;;  %s233_s6 = sand.u32 1, %s383_s12  }
 0x16a   : > { %s234_s7 = scalar_lea.sflag [#allocation3], %s233_s6 }
 0x16b   : > { %p295_p0 = pnand %p298_p13, %p460_p6 }
 0x16d   : > { %p296_p1 = pneg %p295_p0 }
 0x16f   : > { %378 = dma.done.wait (%p296_p1), %s234_s7, 128  }
 0x170   : > { %380 = vsyncadd (%p296_p1), %s234_s7, 4294967168  ;;  %p13_p2 = scmp.ge.s32.totalorder %s443_s18, 4   ;;  %s520_s12 = smov %s387_s13 }
 0x171   : > { %s521_s13 = smov %s391_s14  ;;  %s522_s14 = smov %s454_s21 }
 0x172   : > { %s523_s15 = smov %s443_s18  ;;  %15 = sbr.rel (!%p13_p2) target bundleno = 3 (0x3), region = 67 }
 0x177   :  { %239 = vsyncpa [#allocation3], 1 }
 0x178   :  { %241 = vsyncpa [#allocation3 + $0x1], 1 }

// kernel: gpt2_decoder_forward.7
= control target key start
LH: loop header
LB: loop body
LE: loop exit
PB: predicated region body
PF: predicated region fallthrough
CT: control target
= control target key end

     0   :  { %s466_s18 = smov 0   ;;  %s505_s0 = inlined_call_operand.vmem [shape: f32[16,32], index: 0, kind: input, shape index: {}]   ;;  %s506_s1 = inlined_call_operand.vmem [shape: f32[1,32], index: 1, kind: input, shape index: {}]   ;;  %s507_s2 = inlined_call_operand.vmem [shape: f32[1,32], index: 2, kind: input, shape index: {}]   ;;  %s508_s3 = inlined_call_operand.vmem [shape: bf16[32,96], index: 3, kind: input, shape index: {}]   ;;  %s509_s4 = inlined_call_operand.vmem [shape: f32[1,96], index: 4, kind: input, shape index: {}]   ;;  %s510_s5 = inlined_call_operand.vmem [shape: bf16[16,96], index: 5, kind: output, shape index: {}]  }
   0x1 LB: > { %s384_s19 = sadd.s32 4294967295, %s432_s18   ;;  %p388_p0 = scmp.ge.s32.totalorder %s432_s18, 1  ;;  %s432_s18 = sphi %s466_s18, %s15_s18  }
   0x2   : > { %p186_p1 = scmp.lt.s32.totalorder %s432_s18, 3 }
   0x4   : > { %p187_p2 = pnand %p388_p0, %p186_p1 }
   0x5   : > { %p212_p3 = scmp.lt.s32.totalorder (!%p187_p2), %s384_s19, 1 }
   0x6   : > { %190 = sbr.rel (%p187_p2) target bundleno = 540 (0x21c), region = 40 }
   0xb   : > { %s512_s19 = smov (!%p212_p3, %s384_s19), 1  ;;  %vm224_vm0 = vcmask 261120   ;;  %v420_v7 = vld [vmem:[%s508_s3 + $0x8] sm:$0xff]   ;;  %v434_v8 = vmov 0.0   ;;  %vm435_vm1 = vmmov 0   ;;  %v421_v9 = vld [vmem:[%s508_s3] sm:$0xff]  }
   0xc   : > { %s389_s20 = sshll.u32 %s512_s19, 3  ;;  %402 = vmatprep.subr.bf16.mxu0 %v434_v8  ;;  %406 = vmatprep.mubr.msk.bf16.mxu0 %vm435_vm1, %v434_v8  ;;  %v391_v18 = vld [vmem:[%s506_s1] ss:$0 sm:$0xff]  ;;  %s390_s9 = sshll.u32 %s512_s19, 2  ;;  %vm329_vm4 = vcmask 781312  }
   0xd   : > { %s215_s23 = scalar_lea.vmem %s505_s0, %s389_s20  ;;  %403 = vmatpush3.bf16.msra.mxu0 %v420_v7  ;;  %v392_v21 = vld [vmem:[%s507_s2] ss:$0 sm:$0xff]  ;;  %s219_s12 = scalar_lea.vmem %s510_s5, %s390_s9 }
   0xe   : > { %v221_v0 = vld [vmem:[%s215_s23] sm:$0xff]  ;;  %404 = vmatprep.subr.bf16.mxu0 %v434_v8 }
   0xf   : > { %v225_v1 = vsel %vm224_vm0, %v221_v0, 0.0  ;;  %v393_v25 = vld [vmem:[%s509_s4] ss:$0 sm:$0xff] }
  0x10   : > { %226 = vadd.xlane.f32.xlu0 %v225_v1 }
  0x11   : > { %405 = vmatpush3.bf16.msra.mxu0 %v421_v9 }
  0x99   : > { %v227_v2 = vpop.xlane.xlu0 %226 }
  0x9a   : > { %v229_v3 = vmul.f32 0.03125, %v227_v2 }
  0x9c   : > { %v230_v4 = vsub.f32 %v221_v0, %v229_v3 }
  0x9e   : > { %v231_v5 = vmul.f32 %v230_v4, %v230_v4  ;;  %v243_v19 = vmul.f32 %v391_v18, %v230_v4 }
  0xa0   : > { %v232_v6 = vsel %vm224_vm0, %v231_v5, 0.0 }
  0xa1   : > { %233 = vadd.xlane.f32.xlu0 %v232_v6 }
 0x12a   : > { %v234_v10 = vpop.xlane.xlu0 %233 }
 0x12b   : > { %v236_v11 = vmul.f32 0.032258064, %v234_v10 }
 0x12d   : > { %422 = vrsqrt.f32 %v236_v11  ;;  %vm246_vm2 = vcmp.eq.f32.partialorder %v236_v11, inf  ;;  %v249_v14 = vand.u32 2147483648, %v236_v11  ;;  %vm248_vm3 = vcmp.eq.f32.partialorder %v236_v11, 0.0 }
 0x13a   : > { %v423_v12 = vpop.eup %422 }
 0x13b   : > { %v245_v13 = vmul.f32 %v423_v12, %v236_v11 }
 0x13d   : > { %v247_v15 = vsel %vm246_vm2, %v236_v11, %v245_v13 }
 0x13e   : > { %v250_v16 = vsel %vm248_vm3, %v249_v14, %v247_v15 }
 0x13f   : > { %v251_v17 = vadd.f32 1e-06, %v250_v16 }
 0x141   : > { %424 = vrcp.f32 %v251_v17 }
 0x14e   : > { %v425_v20 = vpop.eup %424 }
 0x14f   : > { %v253_v22 = vmul.f32 %v425_v20, %v243_v19 }
 0x151   : > { %v260_v23 = vadd.f32 %v392_v21, %v253_v22 }
 0x153   : > { %v261_v24 = vpack.c.bf16 %v260_v23, %v260_v23 }
 0x155   : > { %407 = vmatmul.mubr.msk.bf16.vlgmr.msra.gmra.mxu0 %vm224_vm0, %v261_v24 }
 0x215   : > { %v322_v26 = vpop.f32.mrf.mxu0 }
 0x216   : > { %v323_v27 = vadd.f32 %v393_v25, %v322_v26 }
 0x217   : > { %v408_v28 = vpop.f32.mrf.mxu0 }
 0x218   : > { %v328_v29 = vpack.c.bf16 %v323_v27, %v323_v27 }
 0x219   : > { %v325_v30 = vpop.f32.mrf.mxu0 }
 0x21a   : > { %330 = vst.msk [vmem:[%s219_s12] sm:$0xf] %vm329_vm4, %v328_v29 }
 0x21b   : > { %v409_v31 = vpop.f32.mrf.mxu0 }
 0x21c PF: > { %s15_s18 = sadd.s32 1, %s432_s18  }
 0x21d   : > { %p12_p4 = scmp.ge.s32.totalorder %s15_s18, 4  }
 0x21f   :  { %14 = sbr.rel (!%p12_p4) target bundleno = 1 (0x1), region = 70 }

// kernel: gpt2_decoder_forward.9
= control target key start
LH: loop header
LB: loop body
LE: loop exit
PB: predicated region body
PF: predicated region fallthrough
CT: control target
= control target key end

     0   :  { %s862_s13 = smov 0   ;;  %s950_s0 = inlined_call_operand.vmem [shape: bf16[16,32], index: 0, kind: input, shape index: {}]   ;;  %s951_s1 = inlined_call_operand.vmem [shape: f32[16,32], index: 1, kind: input, shape index: {}]   ;;  %s952_s2 = inlined_call_operand.vmem [shape: bf16[32,32], index: 2, kind: input, shape index: {}]   ;;  %s953_s3 = inlined_call_operand.vmem [shape: f32[1,32], index: 3, kind: input, shape index: {}]   ;;  %s954_s4 = inlined_call_operand.vmem [shape: f32[1,32], index: 4, kind: input, shape index: {}]   ;;  %s955_s5 = inlined_call_operand.vmem [shape: f32[1,32], index: 5, kind: input, shape index: {}]   ;;  %s956_s6 = inlined_call_operand.vmem [shape: bf16[32,64], index: 6, kind: input, shape index: {}]   ;;  %s957_s7 = inlined_call_operand.vmem [shape: f32[1,64], index: 7, kind: input, shape index: {}]   ;;  %s958_s8 = inlined_call_operand.vmem [shape: bf16[64,32], index: 8, kind: input, shape index: {}]   ;;  %s959_s9 = inlined_call_operand.vmem [shape: f32[1,32], index: 9, kind: input, shape index: {}]   ;;  %s960_s10 = inlined_call_operand.vmem [shape: f32[16,32], index: 10, kind: output, shape index: {}]  }
   0x1 LB: > { %s708_s14 = sadd.s32 4294967295, %s803_s13   ;;  %p712_p0 = scmp.ge.s32.totalorder %s803_s13, 1  ;;  %s803_s13 = sphi %s862_s13, %s20_s13  }
   0x2   : > { %p320_p1 = scmp.lt.s32.totalorder %s803_s13, 3 }
   0x4   : > { %p321_p2 = pnand %p712_p0, %p320_p1 }
   0x5   : > { %p360_p3 = scmp.lt.s32.totalorder (!%p321_p2), %s708_s14, 1 }
   0x6   : > { %324 = sbr.rel (%p321_p2) target bundleno = 969 (0x3c9), region = 60 }
   0xb   : > { %v783_v0 = vld [vmem:[%s952_s2 + $0x8] sm:$0xff]   ;;  %v805_v1 = vmov 0.0   ;;  %v784_v2 = vld [vmem:[%s952_s2] sm:$0xff]   ;;  %vm806_vm0 = vmmov 0   ;;  %s962_s14 = smov (!%p360_p3, %s708_s14), 1  ;;  %vm398_vm1 = vcmask 261120  }
   0xc   : > { %745 = vmatprep.subr.bf16.mxu1 %v805_v1  ;;  %761 = vmatprep.subr.bf16.mxu0 %v805_v1  ;;  %s713_s19 = sshll.u32 %s962_s14, 2  ;;  %s714_s23 = sshll.u32 %s962_s14, 3  ;;  %v716_v4 = vld [vmem:[%s953_s3] ss:$0 sm:$0xff]  ;;  %v785_v18 = vld [vmem:[%s956_s6 + $0x8] sm:$0xff]   ;;  %v787_v35 = vld [vmem:[%s958_s8 + $0x18] sm:$0xff]  }
   0xd   : > { %746 = vmatpush3.bf16.msra.mxu1 %v783_v0  ;;  %749 = vmatprep.mubr.msk.bf16.mxu1 %vm806_vm0, %v805_v1  ;;  %s363_s22 = scalar_lea.vmem %s950_s0, %s713_s19  ;;  %s367_s26 = scalar_lea.vmem %s951_s1, %s714_s23  ;;  %v786_v19 = vld [vmem:[%s956_s6] sm:$0xff]   ;;  %v788_v36 = vld [vmem:[%s958_s8 + $0x10] sm:$0xff]   ;;  %v789_v37 = vld [vmem:[%s958_s8 + $0x8] sm:$0xff]   ;;  %vm597_vm4 = vcmask 523264  }
   0xe   : > { %747 = vmatprep.subr.bf16.mxu1 %v805_v1  ;;  %769 = vmatprep.mubr.msk.bf16.mxu0 %vm806_vm0, %v805_v1  ;;  %v374_v3 = vld [vmem:[%s363_s22] sm:$0xf]  ;;  %s371_s16 = scalar_lea.vmem %s960_s10, %s714_s23 }
   0xf   : > { %v373_v5 = vld [vmem:[%s367_s26] sm:$0xff]  ;;  %762 = vmatpush3.bf16.msra.mxu0 %v787_v35 }
  0x10   : > { %v720_v28 = vld [vmem:[%s954_s4] ss:$0 sm:$0xff]  ;;  %763 = vmatprep.subr.bf16.mxu0 %v805_v1 }
  0x11   : > { %748 = vmatpush3.bf16.msra.mxu1 %v784_v2  ;;  %v721_v31 = vld [vmem:[%s955_s5] ss:$0 sm:$0xff] }
  0x12   : > { %753 = vmatprep.subr.bf16.mxu1 %v805_v1  ;;  %v790_v38 = vld [vmem:[%s958_s8] sm:$0xff]  }
  0x13   : > { %764 = vmatpush3.bf16.msra.mxu0 %v788_v36  ;;  %v722_v39 = vld [vmem:[%s957_s7] ss:$0 sm:$0xff] }
  0x14   : > { %750 = vmatmul.mubr.msk.bf16.vlgmr.msra.gmra.mxu1 %vm398_vm1, %v374_v3  ;;  %765 = vmatprep.subr.bf16.mxu0 %v805_v1  ;;  %v726_v55 = vld [vmem:[%s959_s9] ss:$0 sm:$0xff] }
  0x15   : > { %757 = vmatprep.mubr.msk.bf16.mxu1 %vm806_vm0, %v805_v1  ;;  %754 = vmatpush3.bf16.msra.mxu1 %v785_v18 }
  0x16   : > { %755 = vmatprep.subr.bf16.mxu1 %v805_v1 }
  0x17   : > { %766 = vmatpush3.bf16.msra.mxu0 %v789_v37 }
  0x18   : > { %767 = vmatprep.subr.bf16.mxu0 %v805_v1 }
  0x19   : > { %756 = vmatpush3.bf16.msra.mxu1 %v786_v19 }
  0x1b   : > { %768 = vmatpush3.bf16.msra.mxu0 %v790_v38 }
  0xd4   : > { %v436_v6 = vpop.f32.mrf.mxu1 }
  0xd5   : > { %v437_v7 = vadd.f32 %v716_v4, %v436_v6 }
  0xd6   : > { %v751_v8 = vpop.f32.mrf.mxu1 }
  0xd7   : > { %v899_v9 = vadd.f32 %v437_v7, %v373_v5 }
  0xd8   : > { %v439_v10 = vpop.f32.mrf.mxu1 }
  0xd9   : > { %v445_v11 = vsel %vm398_vm1, %v899_v9, 0.0 }
  0xda   : > { %446 = vadd.xlane.f32.xlu0 %v445_v11  ;;  %v752_v12 = vpop.f32.mrf.mxu1 }
 0x163   : > { %v447_v13 = vpop.xlane.xlu0 %446 }
 0x164   : > { %v449_v14 = vmul.f32 0.03125, %v447_v13 }
 0x166   : > { %v450_v15 = vsub.f32 %v899_v9, %v449_v14 }
 0x168   : > { %v451_v16 = vmul.f32 %v450_v15, %v450_v15  ;;  %v463_v29 = vmul.f32 %v720_v28, %v450_v15 }
 0x16a   : > { %v452_v17 = vsel %vm398_vm1, %v451_v16, 0.0 }
 0x16b   : > { %453 = vadd.xlane.f32.xlu0 %v452_v17 }
 0x1f4   : > { %v454_v20 = vpop.xlane.xlu0 %453 }
 0x1f5   : > { %v456_v21 = vmul.f32 0.032258064, %v454_v20 }
 0x1f7   : > { %791 = vrsqrt.f32 %v456_v21  ;;  %vm466_vm2 = vcmp.eq.f32.partialorder %v456_v21, inf  ;;  %v469_v24 = vand.u32 2147483648, %v456_v21  ;;  %vm468_vm3 = vcmp.eq.f32.partialorder %v456_v21, 0.0 }
 0x204   : > { %v792_v22 = vpop.eup %791 }
 0x205   : > { %v465_v23 = vmul.f32 %v792_v22, %v456_v21 }
 0x207   : > { %v467_v25 = vsel %vm466_vm2, %v456_v21, %v465_v23 }
 0x208   : > { %v470_v26 = vsel %vm468_vm3, %v469_v24, %v467_v25 }
 0x209   : > { %v471_v27 = vadd.f32 1e-06, %v470_v26 }
 0x20b   : > { %793 = vrcp.f32 %v471_v27 }
 0x218   : > { %v794_v30 = vpop.eup %793 }
 0x219   : > { %v473_v32 = vmul.f32 %v794_v30, %v463_v29 }
 0x21b   : > { %v480_v33 = vadd.f32 %v721_v31, %v473_v32 }
 0x21d   : > { %v481_v34 = vpack.c.bf16 %v480_v33, %v480_v33 }
 0x21f   : > { %758 = vmatmul.mubr.msk.bf16.vlgmr.msra.gmra.mxu1 %vm398_vm1, %v481_v34 }
 0x2df   : > { %v542_v40 = vpop.f32.mrf.mxu1 }
 0x2e0   : > { %v543_v41 = vadd.f32 %v722_v39, %v542_v40 }
 0x2e1   : > { %v759_v42 = vpop.f32.mrf.mxu1 }
 0x2e2   : > { %v548_v43 = vmul.f32 %v543_v41, %v543_v41 }
 0x2e3   : > { %v545_v44 = vpop.f32.mrf.mxu1 }
 0x2e4   : > { %v549_v45 = vmul.f32 %v548_v43, %v543_v41 }
 0x2e5   : > { %v760_v46 = vpop.f32.mrf.mxu1 }
 0x2e6   : > { %v550_v47 = vmul.f32 0.044715, %v549_v45 }
 0x2e8   : > { %v551_v48 = vadd.f32 %v550_v47, %v543_v41 }
 0x2ea   : > { %v552_v49 = vmul.f32 0.7978846, %v551_v48 }
 0x2ec   : > { %795 = vtanh.f32 %v552_v49 }
 0x2f9   : > { %v796_v50 = vpop.eup %795 }
 0x2fa   : > { %v554_v51 = vadd.f32 1.0, %v796_v50 }
 0x2fc   : > { %v555_v52 = vmul.f32 0.5, %v554_v51 }
 0x2fe   : > { %v556_v53 = vmul.f32 %v555_v52, %v543_v41 }
 0x300   : > { %v557_v54 = vpack.c.bf16 %v556_v53, %v556_v53 }
 0x302   : > { %770 = vmatmul.mubr.msk.bf16.vlgmr.msra.gmra.mxu0 %vm597_vm4, %v557_v54 }
 0x3c2   : > { %v635_v56 = vpop.f32.mrf.mxu0 }
 0x3c3   : > { %v636_v57 = vadd.f32 %v726_v55, %v635_v56 }
 0x3c4   : > { %v771_v58 = vpop.f32.mrf.mxu0 }
 0x3c5   : > { %v641_v59 = vadd.f32 %v636_v57, %v899_v9 }
 0x3c6   : > { %v638_v60 = vpop.f32.mrf.mxu0 }
 0x3c7   : > { %642 = vst.msk [vmem:[%s371_s16] sm:$0xff] %vm398_vm1, %v641_v59 }
 0x3c8   : > { %v772_v61 = vpop.f32.mrf.mxu0 }
 0x3c9 PF: > { %s20_s13 = sadd.s32 1, %s803_s13  }
 0x3ca   : > { %p17_p4 = scmp.ge.s32.totalorder %s20_s13, 4  }
 0x3cc   :  { %19 = sbr.rel (!%p17_p4) target bundleno = 1 (0x1), region = 93 }

</bundles_post_ra>
